<compile_context>
chip_gen: v5e
topology: v5e:2x2
jax: 0.10.0
libtpu: 0.0.40
codegen_flags: <defaults>
</compile_context>

<pallas_src>
import functools

import jax
import jax.numpy as jnp
from jax import lax
from jax.experimental import pallas as pl
from jax.experimental.pallas import tpu as pltpu

_NEG_INF = -1e30  # inert padding value for the padded vocab lanes


def _round_up(x, m):
    return (x + m - 1) // m * m


def _logits_kernel(idx_ref, table_ref, logits_ref, *, tile_n):
    """Gather one tile of logits: logits[r, :] = table[idx[base + r], :]."""
    base = pl.program_id(0) * tile_n

    def body(r, carry):
        v = idx_ref[base + r]                                   # SMEM scalar read
        logits_ref[pl.ds(r, 1), :] = table_ref[pl.ds(v, 1), :]  # dynamic row copy
        return carry

    lax.fori_loop(0, tile_n, body, 0)


def _logits_loss_kernel(idx_ref, tgt_ref, table_ref, logits_ref, nll_ref, *, tile_n):
    """Gather a tile of logits and compute per-row NLL (cross entropy terms)."""
    base = pl.program_id(0) * tile_n
    v_pad = table_ref.shape[1]
    # Hoisted once per tile (JAX does not CSE broadcasts inside the loop).
    lane = lax.broadcasted_iota(jnp.int32, (1, v_pad), 1)

    def body(r, carry):
        v = idx_ref[base + r]
        t = tgt_ref[base + r]
        row = table_ref[pl.ds(v, 1), :]                         # (1, v_pad)
        logits_ref[pl.ds(r, 1), :] = row
        # Target-logit pick fused into the gather pass (no full one-hot temp).
        picked = jnp.sum(jnp.where(lane == t, row, 0.0), axis=1, keepdims=True)
        nll_ref[pl.ds(r, 1), :] = picked                        # stash logits[r, tgt[r]]
        return carry

    lax.fori_loop(0, tile_n, body, 0)

    # Numerically stable logsumexp over the (lane-dense, padded) vocab dim.
    lg = logits_ref[...]                                        # (tile_n, v_pad)
    m = jnp.max(lg, axis=-1, keepdims=True)
    lse = m + jnp.log(jnp.sum(jnp.exp(lg - m), axis=-1, keepdims=True))
    nll_ref[...] = lse - nll_ref[...]                           # per-row NLL


def simple_jack_forward(idx, table, targets=None, *, max_tile_n=256):
    """Pallas equivalent of SimpleJack.forward.

    idx:     (B, T) int32 token ids
    table:   (V, V) float32 embedding table (token -> logits row)
    targets: (B, T) int32 or None
    returns: (logits (B, T, V) float32, loss scalar float32 or None)
    """
    B, T = idx.shape
    V = table.shape[0]
    N = B * T

    v_pad = _round_up(max(V, 128), 128)          # lane-dense output width
    tile_n = min(max_tile_n, _round_up(N, 8))    # rows per grid step
    n_pad = _round_up(N, tile_n)
    grid_n = n_pad // tile_n

    # Pad the vocab (lane) dim with a large negative so padded columns are
    # inert under max / logsumexp; padded columns are sliced off in the wrapper.
    table_pad = jnp.pad(table.astype(jnp.float32), ((0, 0), (0, v_pad - V)),
                        constant_values=_NEG_INF)
    idx_flat = jnp.pad(idx.reshape(-1).astype(jnp.int32), (0, n_pad - N))

    compiler_params = pltpu.CompilerParams(dimension_semantics=("parallel",))
    table_spec = pl.BlockSpec((V, v_pad), lambda i, *_: (0, 0))        # resident
    logits_spec = pl.BlockSpec((tile_n, v_pad), lambda i, *_: (i, 0))  # streamed

    if targets is None:
        logits_pad = pl.pallas_call(
            functools.partial(_logits_kernel, tile_n=tile_n),
            out_shape=jax.ShapeDtypeStruct((n_pad, v_pad), jnp.float32),
            grid_spec=pltpu.PrefetchScalarGridSpec(
                num_scalar_prefetch=1,
                grid=(grid_n,),
                in_specs=[table_spec],
                out_specs=logits_spec,
            ),
            compiler_params=compiler_params,
        )(idx_flat, table_pad)
        logits = logits_pad[:N, :V].reshape(B, T, V)
        return logits, None

    tgt_flat = jnp.pad(targets.reshape(-1).astype(jnp.int32), (0, n_pad - N))
    nll_spec = pl.BlockSpec((tile_n, 1), lambda i, *_: (i, 0))

    logits_pad, nll = pl.pallas_call(
        functools.partial(_logits_loss_kernel, tile_n=tile_n),
        out_shape=(
            jax.ShapeDtypeStruct((n_pad, v_pad), jnp.float32),
            jax.ShapeDtypeStruct((n_pad, 1), jnp.float32),
        ),
        grid_spec=pltpu.PrefetchScalarGridSpec(
            num_scalar_prefetch=2,
            grid=(grid_n,),
            in_specs=[table_spec],
            out_specs=(logits_spec, nll_spec),
        ),
        compiler_params=compiler_params,
    )(idx_flat, tgt_flat, table_pad)

    logits = logits_pad[:N, :V].reshape(B, T, V)
    loss = jnp.mean(nll[:N, 0])                  # mean over the N valid rows
    return logits, loss


# TODO(synk): SimpleJack.generate (autoregressive multinomial sampling loop) is a
# host-side loop and is not implemented as a Pallas kernel.


if __name__ == "__main__":
    # Shapes consistent with the module's docstring: batch=4, time=8.
    B, T, V = 4, 8, 32

    key = jax.random.PRNGKey(0)
    k_table, k_idx, k_tgt = jax.random.split(key, 3)

    # nn.Embedding default init: N(0, 1)
    table = jax.random.normal(k_table, (V, V), dtype=jnp.float32)
    idx = jax.random.randint(k_idx, (B, T), 0, V, dtype=jnp.int32)
    targets = jax.random.randint(k_tgt, (B, T), 0, V, dtype=jnp.int32)

    # Training path (logits + loss) and inference path (logits only).
    logits, loss = simple_jack_forward(idx, table, targets)
    jax.block_until_ready((logits, loss))
    logits_nl, loss_nl = simple_jack_forward(idx, table)
    jax.block_until_ready(logits_nl)

    # Pure-JAX reference check (embedding lookup + mean cross entropy).
    ref_logits = table[idx]                                # (B, T, V)
    lf = ref_logits.reshape(B * T, V)
    tf = targets.reshape(B * T)
    lse = jax.scipy.special.logsumexp(lf, axis=-1)
    ref_loss = jnp.mean(lse - lf[jnp.arange(B * T), tf])

    assert logits.shape == (B, T, V)
    assert jnp.allclose(logits, ref_logits, atol=1e-5, rtol=1e-5)
    assert jnp.allclose(logits_nl, ref_logits, atol=1e-5, rtol=1e-5)
    assert loss_nl is None
    assert jnp.allclose(loss, ref_loss, atol=1e-5, rtol=1e-5)

    print("KERNEL_OK")
</pallas_src>

<mosaic_0001>
module attributes {stable_mosaic.version = 11 : i64} {
  func.func @_logits_loss_kernel(%arg0: i32, %arg1: memref<32xi32, #tpu.memory_space<smem>>, %arg2: memref<32xi32, #tpu.memory_space<smem>>, %arg3: memref<32x128xf32, #tpu.memory_space<vmem>>, %arg4: memref<32x128xf32, #tpu.memory_space<vmem>>, %arg5: memref<32x1xf32, #tpu.memory_space<vmem>>) attributes {dimension_semantics = [#tpu.dimension_semantics<parallel>], iteration_bounds = array<i64: 1>, scalar_prefetch = 2 : i64, scratch_operands = 0 : i64, tpu.core_type = #tpu.core_type<tc>, window_params = [{pipeline_mode = #tpu.pipeline_mode<synchronous>, transform_indices = @transform_0, window_bounds = array<i64: 32, 128>}, {transform_indices = @transform_1, window_bounds = array<i64: 32, 128>}, {transform_indices = @transform_2, window_bounds = array<i64: 32, 1>}]} {
    %c32_i32 = arith.constant 32 : i32
    %0 = arith.muli %arg0, %c32_i32 : i32
    %1 = tpu.iota {dimensions = array<i32: 1>} : vector<1x128xi32>
    %c0_i32 = arith.constant 0 : i32
    %c32_i32_0 = arith.constant 32 : i32
    %2 = arith.addi %c0_i32, %c32_i32_0 : i32
    %c1_i32 = arith.constant 1 : i32
    scf.for %arg6 = %c0_i32 to %2 step %c1_i32  : i32 {
      %16 = arith.addi %0, %arg6 : i32
      %17 = arith.index_cast %16 : i32 to index
      %18 = memref.load %arg1[%17] : memref<32xi32, #tpu.memory_space<smem>>
      %19 = arith.addi %0, %arg6 : i32
      %20 = arith.index_cast %19 : i32 to index
      %21 = memref.load %arg2[%20] : memref<32xi32, #tpu.memory_space<smem>>
      %22 = arith.index_cast %18 : i32 to index
      %c0_8 = arith.constant 0 : index
      %23 = vector.load %arg3[%22, %c0_8] : memref<32x128xf32, #tpu.memory_space<vmem>>, vector<1x128xf32>
      %24 = arith.index_cast %arg6 : i32 to index
      %c0_9 = arith.constant 0 : index
      %25 = vector.load %arg4[%24, %c0_9] : memref<32x128xf32, #tpu.memory_space<vmem>>, vector<1x128xf32>
      tpu.vector_store %arg4[%24, %c0_9], %23 {strides = array<i32>} : memref<32x128xf32, #tpu.memory_space<vmem>>, vector<1x128xf32>,
      %26 = vector.broadcast %21 : i32 to vector<1x128xi32>
      %27 = arith.cmpi eq, %1, %26 : vector<1x128xi32>
      %cst_10 = arith.constant 0.000000e+00 : f32
      %28 = vector.broadcast %cst_10 : f32 to vector<1x128xf32>
      %29 = arith.select %27, %23, %28 : vector<1x128xi1>, vector<1x128xf32>
      %cst_11 = arith.constant dense<0.000000e+00> : vector<1xf32>
      %30 = vector.multi_reduction <add>, %29, %cst_11 [1] : vector<1x128xf32> to vector<1xf32>
      %31 = vector.shape_cast %30 : vector<1xf32> to vector<1x1xf32>
      %32 = arith.index_cast %arg6 : i32 to index
      %c0_12 = arith.constant 0 : index
      %33 = vector.load %arg5[%32, %c0_12] : memref<32x1xf32, #tpu.memory_space<vmem>>, vector<1x1xf32>
      tpu.vector_store %arg5[%32, %c0_12], %31 {strides = array<i32>} : memref<32x1xf32, #tpu.memory_space<vmem>>, vector<1x1xf32>,
    }
    %c32_i32_1 = arith.constant 32 : i32
    %c0 = arith.constant 0 : index
    %c0_2 = arith.constant 0 : index
    %3 = vector.load %arg4[%c0, %c0_2] : memref<32x128xf32, #tpu.memory_space<vmem>>, vector<32x128xf32>
    %cst = arith.constant dense<0xFF800000> : vector<32xf32>
    %4 = vector.multi_reduction <maximumf>, %3, %cst [1] : vector<32x128xf32> to vector<32xf32>
    %5 = vector.shape_cast %4 : vector<32xf32> to vector<32x1xf32>
    %6 = vector.broadcast %5 : vector<32x1xf32> to vector<32x128xf32>
    %7 = arith.subf %3, %6 : vector<32x128xf32>
    %8 = math.exp %7 : vector<32x128xf32>
    %cst_3 = arith.constant dense<0.000000e+00> : vector<32xf32>
    %9 = vector.multi_reduction <add>, %8, %cst_3 [1] : vector<32x128xf32> to vector<32xf32>
    %10 = vector.shape_cast %9 : vector<32xf32> to vector<32x1xf32>
    %11 = math.log %10 : vector<32x1xf32>
    %12 = arith.addf %5, %11 : vector<32x1xf32>
    %c0_4 = arith.constant 0 : index
    %c0_5 = arith.constant 0 : index
    %13 = vector.load %arg5[%c0_4, %c0_5] : memref<32x1xf32, #tpu.memory_space<vmem>>, vector<32x1xf32>
    %14 = arith.subf %12, %13 : vector<32x1xf32>
    %c0_6 = arith.constant 0 : index
    %c0_7 = arith.constant 0 : index
    %15 = vector.load %arg5[%c0_6, %c0_7] : memref<32x1xf32, #tpu.memory_space<vmem>>, vector<32x1xf32>
    tpu.vector_store %arg5[%c0_6, %c0_7], %14 {strides = array<i32>} : memref<32x1xf32, #tpu.memory_space<vmem>>, vector<32x1xf32>,
    return
  }
  func.func @transform_0(%arg0: i32, %arg1: memref<32xi32, #tpu.memory_space<smem>>, %arg2: memref<32xi32, #tpu.memory_space<smem>>) -> (i32, i32) {
    %c0_i32 = arith.constant 0 : i32
    %c0_i32_0 = arith.constant 0 : i32
    %c0_i32_1 = arith.constant 0 : i32
    return %c0_i32, %c0_i32_0 : i32, i32
  }
  func.func @transform_1(%arg0: i32, %arg1: memref<32xi32, #tpu.memory_space<smem>>, %arg2: memref<32xi32, #tpu.memory_space<smem>>) -> (i32, i32) {
    %c0_i32 = arith.constant 0 : i32
    %c0_i32_0 = arith.constant 0 : i32
    return %arg0, %c0_i32 : i32, i32
  }
  func.func @transform_2(%arg0: i32, %arg1: memref<32xi32, #tpu.memory_space<smem>>, %arg2: memref<32xi32, #tpu.memory_space<smem>>) -> (i32, i32) {
    %c0_i32 = arith.constant 0 : i32
    %c0_i32_0 = arith.constant 0 : i32
    return %arg0, %c0_i32 : i32, i32
  }
}

</mosaic_0001>

<bundles_post_ra>
// kernel: tpu_custom_call.1
= control target key start
LH: loop header
LB: loop body
LE: loop exit
PB: predicated region body
PF: predicated region fallthrough
CT: control target
= control target key end

     0   :  { %s272_s21 = smov [#allocation3]   ;;  %s273_s22 = smov [#allocation4]   ;;  %s352_s0 = inlined_call_operand.hbm [shape: s32[32], index: 0, kind: input, shape index: {}]   ;;  %s353_s2 = inlined_call_operand.hbm [shape: f32[32,128], index: 2, kind: input, shape index: {}]   ;;  %s354_s3 = inlined_call_operand.hbm [shape: f32[32,128], index: 3, kind: output, shape index: {0}]   ;;  %s355_s4 = inlined_call_operand.vmem [shape: f32[32,1], index: 4, kind: output, shape index: {1}]   ;;  %s356_s1 = inlined_call_operand.hbm [shape: s32[32], index: 1, kind: input, shape index: {}]  }
   0x1   :  { %s11_s17 = sshll.u32 %s352_s0, 4  ;;  %s16_s20 = sshll.u32 %s356_s1, 4  ;;  %s12_s17 = int_to_ptr.hbm [resolvable:$true] %s11_s17  ;;  %s17_s20 = int_to_ptr.hbm [resolvable:$true] %s16_s20 }
   0x2   :  { %14 = dma.hbm_to_smem %s12_s17, 16, %s272_s21, [#allocation2] }
   0x3   :  { %19 = dma.hbm_to_smem %s17_s20, 16, %s273_s22, [#allocation2] }
   0x4   :  { %262 = dma.done.wait [#allocation2], 32 }
   0x5   :  { %263 = vsyncadd [#allocation2], 4294967264 }
   0x6   :  { %22 = sfence }
   0x7   :  { %23 = vsyncpa [#allocation6], 0 }
   0x8   :  { %24 = vsyncpa [#allocation7], 0  ;;  %s29_s25 = sshll.u32 %s353_s2, 4  ;;  %s274_s0 = smov [#allocation5]   ;;  %s30_s25 = int_to_ptr.hbm [resolvable:$true] %s29_s25 }
   0x9   :  { %s31_s26 = sshll.u32 %s274_s0, 4  ;;  %s275_s1 = smov 128   ;;  %s32_s26 = int_to_ptr.vmem [resolvable:$true] %s31_s26 }
   0xa   :  { %s276_s27 = smov 8  }
   0xb   :  { %37 = dma.hbm_to_vmem [thread:$0]  %s30_s25, 512, %s32_s26, [#allocation6], %s275_s1, %s275_s1, %s276_s27  }
   0xc   :  { %264 = dma.done.wait [#allocation6], 512  }
   0xd   :  { %265 = vsyncadd [#allocation6], 4294966784  ;;  %v43_v0 = vlaneseq  ;;  %s268_s28 = smov 0  }
   0xf   :  { %v44_v1 = vand.u32 127, %v43_v0 }
  0x10 LB: > { %s52_s29 = sld [smem:[#allocation3 + %s270_s28]]  ;;  %vm61_vm0 = vcmask 1040384   ;;  %s56_s5 = scalar_lea.vmem [#allocation8], %s270_s28  ;;  %vm66_vm2 = vcmask 0   ;;  %s270_s28 = sphi %s268_s28, %s50_s28  }
  0x11   : > { %s53_s2 = sld [smem:[#allocation4 + %s270_s28]]  ;;  %s65_s8 = scalar_lea.vmem %s355_s4, %s270_s28 }
  0x12   : > { %s50_s28 = sadd.s32 1, %s270_s28  }
  0x13   : > { %p47_p0 = scmp.ge.s32.totalorder %s50_s28, 32  }
  0x14   :  { %s277_s9 = smov (%p47_p0), [#allocation8]   ;;  %s131_s13 = sshll.u32 (%p47_p0), %s354_s3, 4  ;;  %vm120_vm3 = vcmask (%p47_p0), 7168   ;;  %s132_s13 = int_to_ptr.hbm [resolvable:$true] %s131_s13 }
  0x15   :  { %s129_s10 = sshll.u32 (%p47_p0), %s277_s9, 4  ;;  %s130_s10 = int_to_ptr.vmem [resolvable:$true] %s129_s10 }
  0x16   : > { %s54_s30 = scalar_lea.vmem [#allocation5], %s52_s29 }
  0x17   : > { %v55_v2 = vld [vmem:[%s54_s30] sm:$0x1]  ;;  %v58_v3 = vstv %s53_s2 }
  0x18   : > { %57 = vst [vmem:[%s56_s5] sm:$0x1] %v55_v2  ;;  %vm59_vm1 = vcmp.eq.s32.totalorder %v44_v1, %v58_v3 }
  0x19   : > { %v60_v4 = vsel %vm59_vm1, %v55_v2, 0.0  ;;  %137 = dma.vmem_to_hbm [thread:$0]  (%p47_p0), %s130_s10, 512, %s132_s13, [#allocation7], %s275_s1, %s275_s1, %s276_s27  }
  0x1a   : > { %v62_v5 = vsel %vm61_vm0, %v60_v4, 0.0 }
  0x1b   : > { %63 = vadd.xlane.f32.xlu0 %v62_v5 }
  0x1f   :  { %v70_v7 = vld [vmem:[#allocation8 + $0x10] sm:$0xff] (%p47_p0)  ;;  %v68_v8 = vld [vmem:[#allocation8] sm:$0xff] (%p47_p0)  ;;  %v71_v9 = vld [vmem:[#allocation8 + $0x18] sm:$0xff] (%p47_p0) }
  0x20   :  { %76 = vmax.xlane.f32.xlu1 (%p47_p0), %v70_v7  ;;  %v69_v10 = vld [vmem:[#allocation8 + $0x8] sm:$0xff] (%p47_p0) }
  0x23   :  { %72 = vmax.xlane.f32.xlu0 (%p47_p0), %v68_v8 }
  0x28   :  { %78 = vmax.xlane.f32.xlu1 (%p47_p0), %v71_v9 }
  0x2b   :  { %74 = vmax.xlane.f32.xlu0 (%p47_p0), %v69_v10 }
  0x8b   :  { %49 = sbr.rel (!%p47_p0) target bundleno = 16 (0x10), region = 46 }
  0x8e   : > { %v64_v6 = vpop.xlane.xlu0 %63 }
  0x8f   : > { %67 = vst.msk [vmem:[%s65_s8] sm:$0x1] %vm66_vm2, %v64_v6 }
  0x93   :  { %v77_v11 = vpop.xlane.xlu1 %76 }
  0x94   :  { %v82_v13 = vsub.f32 %v70_v7, %v77_v11 }
  0x96   :  { %v73_v12 = vpop.xlane.xlu0 %72  ;;  %v88_v15 = vmul.f32 1.442695, %v82_v13  ;;  %v114_v34 = vld [vmem:[%s355_s4 + $0x10] sm:$0xff]  ;;  %v112_v36 = vld [vmem:[%s355_s4] sm:$0xff]  ;;  %v115_v44 = vld [vmem:[%s355_s4 + $0x18] sm:$0xff] }
  0x97   :  { %v80_v14 = vsub.f32 %v68_v8, %v73_v12  ;;  %v113_v47 = vld [vmem:[%s355_s4 + $0x8] sm:$0xff] }
  0x98   :  { %170 = vpow2.f32 %v88_v15 }
  0x99   :  { %v84_v16 = vmul.f32 1.442695, %v80_v14 }
  0x9b   :  { %172 = vpow2.f32 %v84_v16  ;;  %v79_v17 = vpop.xlane.xlu1 %78 }
  0x9c   :  { %v83_v19 = vsub.f32 %v71_v9, %v79_v17 }
  0x9e   :  { %v75_v18 = vpop.xlane.xlu0 %74  ;;  %v171_v21 = vpop.eup %170  ;;  %v90_v22 = vmul.f32 1.442695, %v83_v19 }
  0x9f   :  { %v81_v20 = vsub.f32 %v69_v10, %v75_v18  ;;  %96 = vadd.xlane.f32.xlu0 %v171_v21 }
  0xa0   :  { %174 = vpow2.f32 %v90_v22 }
  0xa1   :  { %v86_v23 = vmul.f32 1.442695, %v81_v20  ;;  %v173_v24 = vpop.eup %172 }
  0xa2   :  { %92 = vadd.xlane.f32.xlu2 %v173_v24 }
  0xa3   :  { %176 = vpow2.f32 %v86_v23 }
  0xa6   :  { %v175_v25 = vpop.eup %174 }
  0xa7   :  { %98 = vadd.xlane.f32.xlu1 %v175_v25 }
  0xa9   :  { %v177_v26 = vpop.eup %176 }
  0xaa   :  { %94 = vadd.xlane.f32.xlu2 %v177_v26 }
 0x112   :  { %v97_v27 = vpop.xlane.xlu0 %96 }
 0x113   :  { %178 = vlog2.f32 %v97_v27 }
 0x115   :  { %v93_v28 = vpop.xlane.xlu2 %92 }
 0x116   :  { %180 = vlog2.f32 %v93_v28 }
 0x119   :  { %v179_v29 = vpop.eup %178 }
 0x11a   :  { %v105_v31 = vmul.f32 0.6931472, %v179_v29  ;;  %v99_v32 = vpop.xlane.xlu1 %98 }
 0x11b   :  { %182 = vlog2.f32 %v99_v32 }
 0x11c   :  { %v181_v30 = vpop.eup %180  ;;  %v110_v37 = vadd.f32 %v105_v31, %v77_v11 }
 0x11d   :  { %v101_v33 = vmul.f32 0.6931472, %v181_v30  ;;  %v95_v35 = vpop.xlane.xlu2 %94 }
 0x11e   :  { %184 = vlog2.f32 %v95_v35  ;;  %v118_v39 = vsub.f32 %v110_v37, %v114_v34 }
 0x11f   :  { %v108_v38 = vadd.f32 %v101_v33, %v73_v12 }
 0x120   :  { %123 = vst.msk [vmem:[%s355_s4 + $0x10] sm:$0xff] %vm120_vm3, %v118_v39 }
 0x121   :  { %v116_v40 = vsub.f32 %v108_v38, %v112_v36  ;;  %v183_v41 = vpop.eup %182 }
 0x122   :  { %v107_v43 = vmul.f32 0.6931472, %v183_v41 }
 0x123   :  { %121 = vst.msk [vmem:[%s355_s4] sm:$0xff] %vm120_vm3, %v116_v40 }
 0x124   :  { %v185_v42 = vpop.eup %184  ;;  %v111_v46 = vadd.f32 %v107_v43, %v79_v17 }
 0x125   :  { %v103_v45 = vmul.f32 0.6931472, %v185_v42 }
 0x126   :  { %v119_v49 = vsub.f32 %v111_v46, %v115_v44 }
 0x127   :  { %v109_v48 = vadd.f32 %v103_v45, %v75_v18 }
 0x128   :  { %124 = vst.msk [vmem:[%s355_s4 + $0x18] sm:$0xff] %vm120_vm3, %v119_v49 }
 0x129   :  { %v117_v50 = vsub.f32 %v109_v48, %v113_v47 }
 0x12b   :  { %122 = vst.msk [vmem:[%s355_s4 + $0x8] sm:$0xff] %vm120_vm3, %v117_v50 }
 0x12c   :  { %266 = dma.done.wait [#allocation7], 512  }
 0x12d   :  { %267 = vsyncadd [#allocation7], 4294966784 }
 0x12e   :  { %146 = vsyncpa [#allocation6], 1 }
 0x12f   :  { %147 = vsyncpa [#allocation7], 1 }

</bundles_post_ra>
